<compile_context>
chip_gen: v7x
topology: tpu7x:2x2x1
jax: 0.10.0
libtpu: 0.0.40
codegen_flags: <defaults>
</compile_context>

<pallas_src>
import functools
import math

import jax
import jax.numpy as jnp
from jax.experimental import pallas as pl
from jax.experimental.pallas import tpu as pltpu


_VMEM_BUDGET = 40 << 20   # target double-buffered footprint (fits v7x's 64 MiB VMEM)
_VMEM_LIMIT = 48 << 20    # scoped VMEM request: >32 MiB for v6e, <64 MiB for v7x


def _round_up(x: int, m: int) -> int:
    return ((x + m - 1) // m) * m


def _sublane(dtype) -> int:
    # Sublane packing multiple for the second-minor dim.
    return {4: 8, 2: 16, 1: 32}.get(jnp.dtype(dtype).itemsize, 8)


# --------------------------------------------------------------------------
# Kernels
# --------------------------------------------------------------------------

def _resident_kernel(x_ref, w_ref, b_ref, o_ref):
    # x_ref: (tm, D_pad)  w_ref: (D_pad, D_pad) in [K, N] layout  b_ref: (1, D_pad)
    acc = jnp.dot(x_ref[...], w_ref[...], preferred_element_type=jnp.float32)
    o_ref[...] = (acc + b_ref[...].astype(jnp.float32)).astype(o_ref.dtype)


def _tiled_kernel_f32(x_ref, w_ref, b_ref, o_ref):
    # f32 output: accumulate straight into the resident output tile (no scratch).
    k = pl.program_id(2)

    @pl.when(k == 0)
    def _():
        o_ref[...] = jnp.broadcast_to(b_ref[...].astype(o_ref.dtype), o_ref.shape)

    o_ref[...] += jnp.dot(x_ref[...], w_ref[...], preferred_element_type=jnp.float32)


def _tiled_kernel_acc(x_ref, w_ref, b_ref, o_ref, acc_ref):
    # Narrow-dtype output: f32 VMEM accumulator, cast on the last K step.
    k = pl.program_id(2)

    @pl.when(k == 0)
    def _():
        acc_ref[...] = jnp.zeros_like(acc_ref)

    acc_ref[...] += jnp.dot(x_ref[...], w_ref[...], preferred_element_type=jnp.float32)

    @pl.when(k == pl.num_programs(2) - 1)
    def _():
        o_ref[...] = (acc_ref[...] + b_ref[...].astype(jnp.float32)).astype(o_ref.dtype)


# --------------------------------------------------------------------------
# Tile selection
# --------------------------------------------------------------------------

def _pick_tm(m_rows: int, sub: int) -> int:
    """Row tile: largest <=512 without excessive padding waste, sublane-aligned."""
    m_al = _round_up(m_rows, sub)
    if m_al <= 512:
        return m_al
    for tm in (512, 256, 128):
        if _round_up(m_al, tm) - m_al <= m_al // 8:   # <= ~12.5% pad waste
            return tm
    return 128


def _resident_tm(m_rows: int, d_pad: int, itemsize: int, sub: int):
    """Row tile for the weight-resident path, or None if it doesn't fit VMEM."""
    w_bytes = 2 * d_pad * d_pad * itemsize            # weight (worst case 2 buffers)
    rem = _VMEM_BUDGET - w_bytes - 2 * d_pad * itemsize
    if rem <= 0:
        return None
    tm = min(512, _round_up(m_rows, sub))
    while tm > sub and 4 * tm * d_pad * itemsize > rem:   # 2x x-tile + 2x out-tile
        tm = max(_round_up(tm // 2, sub), sub)
    if 4 * tm * d_pad * itemsize > rem:
        return None
    return tm


# --------------------------------------------------------------------------
# Core (jitted) 2-D forward
# --------------------------------------------------------------------------

@functools.partial(jax.jit, static_argnames=("allow_resident",))
def _linear_adapter_2d(x2d, w_pad, b_pad, allow_resident=True):
    M, D = x2d.shape
    D_pad = w_pad.shape[1]
    dtype = x2d.dtype
    itemsize = jnp.dtype(dtype).itemsize
    sub = _sublane(dtype)

    tm_res = _resident_tm(M, D_pad, itemsize, sub) if allow_resident else None

    # ---------------- weight-resident fast path ----------------
    if tm_res is not None:
        tm = tm_res
        M_pad = _round_up(max(M, tm), tm)
        x_p = x2d
        if (M_pad, D_pad) != (M, D):
            x_p = jnp.zeros((M_pad, D_pad), dtype).at[:M, :D].set(x2d)

        cost = pl.CostEstimate(
            flops=2 * M_pad * D_pad * D_pad,
            transcendentals=0,
            bytes_accessed=(2 * M_pad * D_pad + D_pad * D_pad + D_pad) * itemsize,
        )
        out_p = pl.pallas_call(
            _resident_kernel,
            out_shape=jax.ShapeDtypeStruct((M_pad, D_pad), dtype),
            grid_spec=pltpu.PrefetchScalarGridSpec(
                num_scalar_prefetch=0,
                grid=(M_pad // tm,),
                in_specs=[
                    pl.BlockSpec((tm, D_pad), lambda i: (i, 0)),      # x rows
                    pl.BlockSpec((D_pad, D_pad), lambda i: (0, 0)),   # weight (resident)
                    pl.BlockSpec((1, D_pad), lambda i: (0, 0)),       # bias (resident)
                ],
                out_specs=pl.BlockSpec((tm, D_pad), lambda i: (i, 0)),
            ),
            compiler_params=pltpu.CompilerParams(
                dimension_semantics=("parallel",),
                vmem_limit_bytes=_VMEM_LIMIT,
            ),
            cost_estimate=cost,
        )(x_p, w_pad, b_pad)
        return out_p[:M, :D]

    # ---------------- tiled fallback (large D) ----------------
    tm = _pick_tm(M, sub)
    tn = max(t for t in (512, 256, 128) if D_pad % t == 0)          # divisor of D_pad
    tk = max(t for t in (1024, 512, 256, 128) if D_pad % t == 0)    # divisor of D_pad
    M_pad = _round_up(max(M, tm), tm)

    x_p = x2d
    if (M_pad, D_pad) != (M, D):
        x_p = jnp.zeros((M_pad, D_pad), dtype).at[:M, :D].set(x2d)

    grid = (M_pad // tm, D_pad // tn, D_pad // tk)
    f32_out = jnp.dtype(dtype) == jnp.dtype(jnp.float32)
    kernel = _tiled_kernel_f32 if f32_out else _tiled_kernel_acc
    scratch = [] if f32_out else [pltpu.VMEM((tm, tn), jnp.float32)]

    cost = pl.CostEstimate(
        flops=2 * M_pad * D_pad * D_pad,
        transcendentals=0,
        bytes_accessed=(
            M_pad * D_pad * (D_pad // tn)          # x re-streamed per N tile
            + D_pad * D_pad * (M_pad // tm)        # weight re-streamed per M tile
            + D_pad
            + M_pad * D_pad                        # output
        ) * itemsize,
    )

    out_p = pl.pallas_call(
        kernel,
        out_shape=jax.ShapeDtypeStruct((M_pad, D_pad), dtype),
        grid_spec=pltpu.PrefetchScalarGridSpec(
            num_scalar_prefetch=0,
            grid=grid,
            in_specs=[
                pl.BlockSpec((tm, tk), lambda i, j, k: (i, k)),   # x tile
                pl.BlockSpec((tk, tn), lambda i, j, k: (k, j)),   # W tile ([K, N])
                pl.BlockSpec((1, tn), lambda i, j, k: (0, j)),    # bias tile
            ],
            out_specs=pl.BlockSpec((tm, tn), lambda i, j, k: (i, j)),
            scratch_shapes=scratch,
        ),
        compiler_params=pltpu.CompilerParams(
            dimension_semantics=("parallel", "parallel", "arbitrary"),
            vmem_limit_bytes=_VMEM_LIMIT,
        ),
        cost_estimate=cost,
    )(x_p, w_pad, b_pad)

    return out_p[:M, :D]


# --------------------------------------------------------------------------
# Public wrappers
# --------------------------------------------------------------------------

def prepare_linear_adapter_params(weight, bias):
    """One-time param prep (hoisted out of the per-call path).

    Transposes the PyTorch-layout weight [out, in] -> [in, out] (MXU-friendly
    [K, N]; no per-tile transposes in the kernel) and zero-pads both weight and
    bias to a lane-dense multiple of 128.
    """
    d_out, d_in = weight.shape
    d_pad = _round_up(max(d_out, d_in), 128)
    w_t = weight.T                                    # [in, out]
    if (d_pad, d_pad) != (d_in, d_out):
        w_p = jnp.zeros((d_pad, d_pad), weight.dtype).at[:d_in, :d_out].set(w_t)
        b_p = jnp.zeros((d_pad,), bias.dtype).at[:d_out].set(bias)
    else:
        w_p, b_p = w_t, bias
    return w_p, b_p.reshape(1, d_pad)


def linear_adapter_apply(x, w_prepared, b_prepared, *, allow_resident=True):
    """Forward with pre-prepared (transposed + padded) params."""
    if isinstance(x, tuple):
        x = x[0]
    orig_shape = x.shape
    D = orig_shape[-1]
    M = math.prod(orig_shape[:-1])
    x2d = x.reshape(M, D)
    out2d = _linear_adapter_2d(x2d, w_prepared, b_prepared,
                               allow_resident=allow_resident)
    return out2d.reshape(orig_shape)


def linear_adapter_forward(x, weight, bias):
    """Pallas equivalent of LinearAdapter.forward with raw PyTorch-layout params.

    For repeated calls, prefer calling prepare_linear_adapter_params once and
    then linear_adapter_apply (avoids re-padding/transposing params per call).
    """
    w_p, b_p = prepare_linear_adapter_params(weight, bias)
    return linear_adapter_apply(x, w_p, b_p)


# --------------------------------------------------------------------------
# Demo / self-test
# --------------------------------------------------------------------------

if __name__ == "__main__":
    key = jax.random.PRNGKey(0)
    k_x, k_w, k_b = jax.random.split(key, 3)

    batch, seq, input_dim = 2, 8, 32
    x = jax.random.normal(k_x, (batch, seq, input_dim), dtype=jnp.float32)
    bound = 1.0 / (input_dim ** 0.5)
    weight = jax.random.uniform(k_w, (input_dim, input_dim), jnp.float32,
                                minval=-bound, maxval=bound)
    bias = jax.random.uniform(k_b, (input_dim,), jnp.float32,
                              minval=-bound, maxval=bound)

    ref = x @ weight.T + bias

    # Params prepared once; weight-resident fast path.
    w_p, b_p = prepare_linear_adapter_params(weight, bias)
    out = jax.block_until_ready(linear_adapter_apply(x, w_p, b_p))
    assert out.shape == x.shape
    assert jnp.allclose(out, ref, atol=1e-5, rtol=1e-5)

    # Tuple-input path from the PyTorch module (and the convenience wrapper).
    out_tuple = jax.block_until_ready(linear_adapter_forward((x,), weight, bias))
    assert jnp.allclose(out_tuple, ref, atol=1e-5, rtol=1e-5)

    # Exercise the tiled (large-D fallback) kernel as well.
    out_tiled = jax.block_until_ready(
        linear_adapter_apply(x, w_p, b_p, allow_resident=False))
    assert jnp.allclose(out_tiled, ref, atol=1e-5, rtol=1e-5)

    print("KERNEL_OK")
</pallas_src>

<mosaic_0001>
module attributes {stable_mosaic.version = 11 : i64} {
  func.func @_resident_kernel(%arg0: i32, %arg1: memref<16x128xf32, #tpu.memory_space<vmem>>, %arg2: memref<128x128xf32, #tpu.memory_space<vmem>>, %arg3: memref<1x128xf32, #tpu.memory_space<vmem>>, %arg4: memref<16x128xf32, #tpu.memory_space<vmem>>) attributes {dimension_semantics = [#tpu.dimension_semantics<parallel>], iteration_bounds = array<i64: 1>, scalar_prefetch = 0 : i64, scratch_operands = 0 : i64, tpu.core_type = #tpu.core_type<tc>, window_params = [{transform_indices = @transform_0, window_bounds = array<i64: 16, 128>}, {pipeline_mode = #tpu.pipeline_mode<synchronous>, transform_indices = @transform_1, window_bounds = array<i64: 128, 128>}, {pipeline_mode = #tpu.pipeline_mode<synchronous>, transform_indices = @transform_2, window_bounds = array<i64: 1, 128>}, {transform_indices = @transform_3, window_bounds = array<i64: 16, 128>}]} {
    %c0 = arith.constant 0 : index
    %c0_0 = arith.constant 0 : index
    %0 = vector.load %arg1[%c0, %c0_0] : memref<16x128xf32, #tpu.memory_space<vmem>>, vector<16x128xf32>
    %c0_1 = arith.constant 0 : index
    %c0_2 = arith.constant 0 : index
    %1 = vector.load %arg2[%c0_1, %c0_2] : memref<128x128xf32, #tpu.memory_space<vmem>>, vector<128x128xf32>
    %cst = arith.constant dense<0.000000e+00> : vector<16x128xf32>
    %2 = tpu.matmul %0, %1, %cst {dimension_numbers = #tpu.dot_dimension_numbers<[1], [0], [0], [1], [0, 0, 1, 1], [], []>} : vector<16x128xf32>, vector<128x128xf32>, vector<16x128xf32> -> vector<16x128xf32>
    %c0_3 = arith.constant 0 : index
    %c0_4 = arith.constant 0 : index
    %3 = vector.load %arg3[%c0_3, %c0_4] : memref<1x128xf32, #tpu.memory_space<vmem>>, vector<1x128xf32>
    %4 = vector.broadcast %3 : vector<1x128xf32> to vector<16x128xf32>
    %5 = arith.addf %2, %4 : vector<16x128xf32>
    %c0_5 = arith.constant 0 : index
    %c0_6 = arith.constant 0 : index
    %6 = vector.load %arg4[%c0_5, %c0_6] : memref<16x128xf32, #tpu.memory_space<vmem>>, vector<16x128xf32>
    tpu.vector_store %arg4[%c0_5, %c0_6], %5 {strides = array<i32>} : memref<16x128xf32, #tpu.memory_space<vmem>>, vector<16x128xf32>,
    return
  }
  func.func @transform_0(%arg0: i32) -> (i32, i32) {
    %c0_i32 = arith.constant 0 : i32
    %c0_i32_0 = arith.constant 0 : i32
    return %arg0, %c0_i32 : i32, i32
  }
  func.func @transform_1(%arg0: i32) -> (i32, i32) {
    %c0_i32 = arith.constant 0 : i32
    %c0_i32_0 = arith.constant 0 : i32
    %c0_i32_1 = arith.constant 0 : i32
    return %c0_i32, %c0_i32_0 : i32, i32
  }
  func.func @transform_2(%arg0: i32) -> (i32, i32) {
    %c0_i32 = arith.constant 0 : i32
    %c0_i32_0 = arith.constant 0 : i32
    %c0_i32_1 = arith.constant 0 : i32
    return %c0_i32, %c0_i32_0 : i32, i32
  }
  func.func @transform_3(%arg0: i32) -> (i32, i32) {
    %c0_i32 = arith.constant 0 : i32
    %c0_i32_0 = arith.constant 0 : i32
    return %arg0, %c0_i32 : i32, i32
  }
}

</mosaic_0001>

<bundles_post_ra>
// kernel: _linear_adapter_2d.1
= control target key start
LH: loop header
LB: loop body
LE: loop exit
PB: predicated region body
PF: predicated region fallthrough
CT: control target
= control target key end

     0   :  { %8 = vsyncpa [#allocation3], 0  ;;  %s349_s0 = inlined_call_operand.vmem [shape: f32[16,128], index: 0, kind: input, shape index: {}]   ;;  %s350_s1 = inlined_call_operand.hbm [shape: f32[128,128], index: 1, kind: input, shape index: {}]   ;;  %s351_s2 = inlined_call_operand.vmem [shape: f32[1,128], index: 2, kind: input, shape index: {}]   ;;  %s352_s3 = inlined_call_operand.hbm [shape: f32[16,128], index: 3, kind: output, shape index: {}]  }
   0x1   :  { %9 = vsyncpa [#allocation4], 0  ;;  %s286_s12 = smov [#allocation2]   ;;  %s238_s16 = scalar_lea.hbm %s350_s1, 2048 }
   0x2   :  { %s17_s13 = sshll.u32 %s286_s12, 4  ;;  %p239_p0 = scmp.ne.s32.totalorder %s350_s1, %s238_s16  ;;  %s18_s13 = int_to_ptr.vmem [resolvable:$true] %s17_s13 }
   0x3   :  { %p242_p1 = scmp.lt.u32.totalorder %s238_s16, %s350_s1 }
   0x5   :  { %p244_p2 = pnand %p242_p1, %p239_p0 }
   0x7   :  { %247 = shalt.err (!%p244_p2)
}
   0x8   :  { %s248_s21 = scalar_lea.vmem %s18_s13, 2048  ;;  %p253_p4 = scmp.lt.s32.totalorder %s18_s13, %s18_s13 }
   0x9   :  { %p249_p3 = scmp.ne.s32.totalorder %s18_s13, %s248_s21  ;;  %p254_p5 = scmp.lt.s32.totalorder %s248_s21, %s248_s21 }
   0xb   :  { %p255_p6 = por %p254_p5, %p253_p4 }
   0xd   :  { %p256_p7 = pnand %p255_p6, %p249_p3 }
   0xf   :  { %259 = shalt.err (!%p256_p7)
}
  0x10   :  { %s287_s22 = smov 128   ;;  %s288_s23 = smov 8  }
  0x11   :  { %23 = dma.hbm_to_vmem [thread:$0]  %s350_s1, 2048, %s18_s13, [#allocation3], %s287_s22, %s287_s22, %s288_s23  }
  0x12   :  { %282 = dma.done.wait [#allocation3], 2048  }
  0x13   :  { %283 = vsyncadd [#allocation3], 4294965248  ;;  %v31_v0 = vld [vmem:[#allocation2] sm:$0xff]  ;;  %v32_v1 = vld [vmem:[#allocation2 + $0x8] sm:$0xff]  ;;  %s289_s4 = smov [#allocation5]  }
  0x14   :  { %v33_v2 = vld [vmem:[#allocation2 + $0x10] sm:$0xff]  ;;  %v202_v3 = vpack.c.bf16 %v32_v1, %v31_v0  ;;  %v34_v4 = vld [vmem:[#allocation2 + $0x18] sm:$0xff]  ;;  %v35_v6 = vld [vmem:[#allocation2 + $0x20] sm:$0xff]  ;;  %s136_s5 = sshll.u32 %s289_s4, 4  ;;  %s137_s5 = int_to_ptr.vmem [resolvable:$true] %s136_s5 }
  0x15   :  { %v206_v5 = vpack.c.bf16 %v34_v4, %v33_v2  ;;  %v36_v7 = vld [vmem:[#allocation2 + $0x28] sm:$0xff]  ;;  %v29_v9 = vld [vmem:[%s349_s0] sm:$0xff]  ;;  %v37_v10 = vld [vmem:[#allocation2 + $0x30] sm:$0xff]  ;;  %s260_s6 = scalar_lea.vmem %s137_s5, 256  ;;  %p265_p9 = scmp.lt.s32.totalorder %s137_s5, %s137_s5 }
  0x16   :  { %203 = vmatprep.subr.bf16.mxu0 %v202_v3  ;;  %v210_v8 = vpack.c.bf16 %v36_v7, %v35_v6  ;;  %v38_v11 = vld [vmem:[#allocation2 + $0x38] sm:$0xff]  ;;  %199 = vmatprep.mubr.f32.mxu0 %v29_v9  ;;  %v39_v13 = vld [vmem:[#allocation2 + $0x40] sm:$0xff]  ;;  %v40_v14 = vld [vmem:[#allocation2 + $0x48] sm:$0xff]  ;;  %p261_p8 = scmp.ne.s32.totalorder %s137_s5, %s260_s6  ;;  %p266_p10 = scmp.lt.s32.totalorder %s260_s6, %s260_s6 }
  0x17   :  { %205 = vmatpush3.bf16.msra.mxu0 %v202_v3  ;;  %v214_v12 = vpack.c.bf16 %v38_v11, %v37_v10  ;;  %v218_v15 = vpack.c.bf16 %v40_v14, %v39_v13  ;;  %v41_v16 = vld [vmem:[#allocation2 + $0x50] sm:$0xff]  ;;  %v42_v17 = vld [vmem:[#allocation2 + $0x58] sm:$0xff]  ;;  %v43_v19 = vld [vmem:[#allocation2 + $0x60] sm:$0xff] }
  0x18   :  { %207 = vmatprep.subr.bf16.mxu0 %v206_v5  ;;  %v222_v18 = vpack.c.bf16 %v42_v17, %v41_v16  ;;  %v44_v20 = vld [vmem:[#allocation2 + $0x68] sm:$0xff]  ;;  %v45_v22 = vld [vmem:[#allocation2 + $0x70] sm:$0xff]  ;;  %v46_v23 = vld [vmem:[#allocation2 + $0x78] sm:$0xff]  ;;  %p267_p11 = por %p266_p10, %p265_p9 }
  0x19   :  { %v226_v21 = vpack.c.bf16 %v44_v20, %v43_v19  ;;  %v230_v24 = vpack.c.bf16 %v46_v23, %v45_v22  ;;  %v30_v25 = vld [vmem:[%s349_s0 + $0x8] sm:$0xff]  ;;  %v148_v26 = vld [vmem:[%s351_s2] ss:$0 sm:$0xff] }
  0x1a   :  { %p268_p12 = pnand %p267_p11, %p261_p8 }
  0x1b   :  { %209 = vmatpush3.bf16.msra.mxu0 %v206_v5 }
  0x1c   :  { %211 = vmatprep.subr.bf16.mxu0 %v210_v8 }
  0x1f   :  { %213 = vmatpush3.bf16.msra.mxu0 %v210_v8 }
  0x20   :  { %215 = vmatprep.subr.bf16.mxu0 %v214_v12 }
  0x23   :  { %217 = vmatpush3.bf16.msra.mxu0 %v214_v12 }
  0x24   :  { %219 = vmatprep.subr.bf16.mxu0 %v218_v15 }
  0x27   :  { %221 = vmatpush3.bf16.msra.mxu0 %v218_v15 }
  0x28   :  { %223 = vmatprep.subr.bf16.mxu0 %v222_v18 }
  0x2b   :  { %225 = vmatpush3.bf16.msra.mxu0 %v222_v18 }
  0x2c   :  { %227 = vmatprep.subr.bf16.mxu0 %v226_v21 }
  0x2f   :  { %229 = vmatpush3.bf16.msra.mxu0 %v226_v21 }
  0x30   :  { %231 = vmatprep.subr.bf16.mxu0 %v230_v24 }
  0x33   :  { %233 = vmatpush3.bf16.msra.mxu0 %v230_v24 }
  0x36   :  { %200 = vmatmul.mubr.f32.vlgmr.msra.gmra.mrb[0].mxu0 %v30_v25 }
 0x109   :  { %v201_v27 = vpop.f32.mrb[0].mxu0 }
 0x10a   :  { %v126_v28 = vadd.f32 %v201_v27, %v148_v26  ;;  %v120_v29 = vpop.f32.mrb[1].mxu0 }
 0x10b   :  { %v121_v30 = vadd.f32 %v148_v26, %v120_v29 }
 0x10c   :  { %130 = vst [vmem:[#allocation5 + $0x8] sm:$0xff] %v126_v28 }
 0x10d   :  { %129 = vst [vmem:[#allocation5] sm:$0xff] %v121_v30 }
 0x10e   :  { %271 = shalt.err (!%p268_p12)
}
 0x10f   :  { %s272_s2 = scalar_lea.hbm %s352_s3, 256 }
 0x110   :  { %p273_p13 = scmp.ne.s32.totalorder %s352_s3, %s272_s2  ;;  %p276_p0 = scmp.lt.u32.totalorder %s272_s2, %s352_s3 }
 0x112   :  { %p278_p1 = pnand %p276_p0, %p273_p13 }
 0x114   :  { %281 = shalt.err (!%p278_p1)
}
 0x115   :  { %142 = dma.vmem_to_hbm [thread:$0]  %s137_s5, 256, %s352_s3, [#allocation4], %s287_s22, %s287_s22, %s288_s23  }
 0x116   :  { %284 = dma.done.wait [#allocation4], 256  }
 0x117   :  { %285 = vsyncadd [#allocation4], 4294967040 }
 0x118   :  { %146 = vsyncpa [#allocation3], 1 }
 0x119   :  { %147 = vsyncpa [#allocation4], 1 }

</bundles_post_ra>
